<compile_context>
chip_gen: v7x
topology: tpu7x:2x2x1
jax: 0.10.0
libtpu: 0.0.40
codegen_flags: <defaults>
</compile_context>

<pallas_src>
import functools
import math

import jax
import jax.numpy as jnp
import numpy as np
from jax.experimental import pallas as pl
from jax.experimental.pallas import tpu as pltpu


def _round_up(x, m):
    return ((x + m - 1) // m) * m


# ----------------------------------------------------------------------------
# Fused kernel: wavelet combos + two attention branches + delta MLPs + residual
# for one row tile (TR rows) of the flattened (N*B, .) space.
# ----------------------------------------------------------------------------
def _reins_fused_kernel(scale_ref, f_ref, taps_ref,
                        t1_ref, t2_ref, t2f1_ref, t2f2_ref,
                        wdf1_ref, bdf1_ref, wdf2_ref, bdf2_ref,
                        out_ref, *, inv_sqrt_d, m_real, compute_dtype):
    f32 = jnp.float32

    def dot_t(a, b):  # a @ b.T (contract last dims), f32 accumulation on MXU
        return jax.lax.dot_general(
            a, b, (((1,), (1,)), ((), ())), preferred_element_type=f32)

    def softmax(x):  # rows of x already carry -1e30 on padded token columns
        m = jnp.max(x, axis=-1, keepdims=True)
        e = jnp.exp(x - m)
        s = jnp.sum(e, axis=-1, keepdims=True)
        return e * pl.reciprocal(s, approx=True)     # EUP reciprocal (free slot)

    # mask for the zero-padded token axis (Mp >= m_real, multiple of 128)
    mp = t1_ref.shape[0]
    col = jax.lax.broadcasted_iota(jnp.int32, (1, mp), 1)
    valid = col < m_real
    neg_bias = jnp.where(valid, 0.0, -1e30).astype(f32)   # (1, Mp)
    validf = valid.astype(f32)
    inv_m = 1.0 / float(m_real)

    # ---- Haar wavelet combos from the four 2x2 taps (pure VPU work) ----
    a = taps_ref[0]       # x00  (TR, c)
    b = taps_ref[1]       # x01
    g = taps_ref[2]       # x10
    d = taps_ref[3]       # x11
    fc = (0.5 * (a + b + g + d)).astype(compute_dtype)                 # LL
    lh = 0.5 * (-a + b - g + d)
    hl = 0.5 * (-a - b + g + d)
    hh = 0.5 * (a - b - g + d)
    fs = jnp.concatenate([lh, hl, hh], axis=-1).astype(compute_dtype)  # (TR, 3c)

    scl = scale_ref[0, 0]                                              # SMEM

    # ---- branch 1: softmax attention over tokens1 -> delta for LL part ----
    s1 = dot_t(fc, t1_ref[...]) * inv_sqrt_d + neg_bias                # (TR, Mp)
    attn1 = softmax(s1)
    d1 = jnp.dot(attn1.astype(compute_dtype), t2f1_ref[...],
                 preferred_element_type=f32)                           # (TR, c)
    x1 = (d1 + fc.astype(f32)).astype(compute_dtype)
    d1 = dot_t(x1, wdf1_ref[...]) + bdf1_ref[...]                      # (TR, c)

    # ---- branch 2: instance-norm + softmax over tokens2 -> delta for LH|HL|HH
    s2 = dot_t(fs, t2_ref[...])                                        # (TR, Mp)
    mu = jnp.sum(s2 * validf, axis=-1, keepdims=True) * inv_m
    dev = (s2 - mu) * validf
    var = jnp.sum(dev * dev, axis=-1, keepdims=True) * inv_m
    s2 = (s2 - mu) * jax.lax.rsqrt(var + 1e-5) * inv_sqrt_d + neg_bias
    attn2 = softmax(s2)
    d2 = jnp.dot(attn2.astype(compute_dtype), t2f2_ref[...],
                 preferred_element_type=f32)                           # (TR, 3c)
    x2 = (d2 + fs.astype(f32)).astype(compute_dtype)
    d2 = dot_t(x2, wdf2_ref[...]) + bdf2_ref[...]                      # (TR, 3c)

    # ---- scaled residual, single lane-dense store ----
    out_ref[...] = f_ref[...] + scl * jnp.concatenate([d1, d2], axis=-1)


# ----------------------------------------------------------------------------
# Forward pass wrapper (reshape glue mimics torch's raw .reshape semantics).
# ----------------------------------------------------------------------------
def reins_forward(params, feats, layer, batch_first=False, has_cls_token=True,
                  compute_dtype=jnp.bfloat16, row_tile_cap=256):
    if batch_first:
        feats = jnp.transpose(feats, (1, 0, 2))
    cls_token = None
    if has_cls_token:
        cls_token, feats = feats[:1], feats[1:]
    N, B, C = feats.shape
    h = int(np.sqrt(N))
    c = C // 4
    NB = N * B

    # --- Haar 2x2 taps via ONE transpose pass.  The torch code raw-reshapes
    # (N,B,C) -> (B,C,h,w); every reshape below is the same raw row-major
    # reinterpretation, so the tap streams land exactly in the (N*B, c) layout
    # that feats_c / feats_s use downstream. ---
    xr = feats.reshape(B * C, h // 2, 2, h // 2, 2)
    taps = jnp.transpose(xr, (2, 4, 0, 1, 3)).reshape(4, NB, c)
    taps = taps.astype(compute_dtype)

    # --- hoisted token->feat MLPs; zeroing row 0 == the reference's [1:]
    # slicing; pad token axis to a lane-dense multiple of 128. ---
    tok1 = params["tokens1"][layer]          # (M, c)
    tok2 = params["tokens2"][layer]          # (M, 3c)
    M = tok1.shape[0]
    Mp = _round_up(M, 128)
    t2f1 = (tok1 @ params["wt2f1"].T + params["bt2f1"]).at[0].set(0.0)
    t2f2 = (tok2 @ params["wt2f2"].T + params["bt2f2"]).at[0].set(0.0)

    def pad_tokens(x):
        return jnp.pad(x, ((0, Mp - M), (0, 0))).astype(compute_dtype)

    tok1p, tok2p = pad_tokens(tok1), pad_tokens(tok2)
    t2f1p, t2f2p = pad_tokens(t2f1), pad_tokens(t2f2)

    # --- row tiling: TR rows / grid step (multiple of 8, capped for VMEM);
    # keep >= 2 grid steps so the parallel axis can use both v7x cores. ---
    NB8 = _round_up(NB, 8)
    TR = min(row_tile_cap, NB8)
    if NB8 // TR < 2 and NB8 >= 16:
        TR = _round_up(NB8 // 2, 8)
    NBp = _round_up(NB8, TR)

    feats2d = feats.reshape(NB, C)
    if NBp != NB:
        feats2d = jnp.pad(feats2d, ((0, NBp - NB), (0, 0)))
        taps = jnp.pad(taps, ((0, 0), (0, NBp - NB), (0, 0)))

    kernel = functools.partial(
        _reins_fused_kernel,
        inv_sqrt_d=float(C) ** (-0.5), m_real=M, compute_dtype=compute_dtype)

    out2d = pl.pallas_call(
        kernel,
        grid=(NBp // TR,),
        in_specs=[
            pl.BlockSpec(memory_space=pltpu.MemorySpace.SMEM),      # scale (1,1)
            pl.BlockSpec((TR, C), lambda i: (i, 0)),                # feats rows
            pl.BlockSpec((4, TR, c), lambda i: (0, i, 0)),          # 2x2 taps
            pl.BlockSpec((Mp, c), lambda i: (0, 0)),                # tokens1
            pl.BlockSpec((Mp, 3 * c), lambda i: (0, 0)),            # tokens2
            pl.BlockSpec((Mp, c), lambda i: (0, 0)),                # t2f1 (hoisted)
            pl.BlockSpec((Mp, 3 * c), lambda i: (0, 0)),            # t2f2 (hoisted)
            pl.BlockSpec((c, c), lambda i: (0, 0)),                 # mlp_delta_f W
            pl.BlockSpec((1, c), lambda i: (0, 0)),                 # mlp_delta_f b
            pl.BlockSpec((3 * c, 3 * c), lambda i: (0, 0)),         # mlp_delta_f2 W
            pl.BlockSpec((1, 3 * c), lambda i: (0, 0)),             # mlp_delta_f2 b
        ],
        out_specs=pl.BlockSpec((TR, C), lambda i: (i, 0)),
        out_shape=jax.ShapeDtypeStruct((NBp, C), jnp.float32),
        compiler_params=pltpu.CompilerParams(
            dimension_semantics=("parallel",)),
    )(params["scale"], feats2d, taps, tok1p, tok2p, t2f1p, t2f2p,
      params["wdf1"].astype(compute_dtype), params["bdf1"],
      params["wdf2"].astype(compute_dtype), params["bdf2"])

    out = out2d[:NB].reshape(N, B, C)
    if has_cls_token:
        out = jnp.concatenate([cls_token, out], axis=0)
    if batch_first:
        out = jnp.transpose(out, (1, 0, 2))
    return out


# ----------------------------------------------------------------------------
# Pure-JAX reference (mirrors the torch forward exactly) for validation.
# ----------------------------------------------------------------------------
def reins_forward_ref(params, feats, layer):
    cls_token, x = feats[:1], feats[1:]
    N, B, C = x.shape
    h = int(np.sqrt(N))
    c = C // 4
    xi = x.reshape(B, C, h, h)
    xr = xi.reshape(B, C, h // 2, 2, h // 2, 2)
    x00 = xr[:, :, :, 0, :, 0]
    x01 = xr[:, :, :, 0, :, 1]
    x10 = xr[:, :, :, 1, :, 0]
    x11 = xr[:, :, :, 1, :, 1]
    ll = 0.5 * (x00 + x01 + x10 + x11)
    lh = 0.5 * (-x00 + x01 - x10 + x11)
    hl = 0.5 * (-x00 - x01 + x10 + x11)
    hh = 0.5 * (x00 - x01 - x10 + x11)
    ll, lh, hl, hh = (ll.reshape(B, N, c), lh.reshape(B, N, c),
                      hl.reshape(B, N, c), hh.reshape(B, N, c))
    feats_c = ll.reshape(N, B, c)
    feats_s = jnp.concatenate([lh, hl, hh], -1).reshape(N, B, 3 * c)
    tok1 = params["tokens1"][layer]
    tok2 = params["tokens2"][layer]
    scale = params["scale"][0, 0]

    attn = jnp.einsum("nbc,mc->nbm", feats_c, tok1)
    attn = jax.nn.softmax(attn * C ** (-0.5), axis=-1)
    t2f = tok1[1:] @ params["wt2f1"].T + params["bt2f1"][0]
    d1 = jnp.einsum("nbm,mc->nbc", attn[:, :, 1:], t2f)
    d1 = (d1 + feats_c) @ params["wdf1"].T + params["bdf1"][0]

    attn2 = jnp.einsum("nbc,mc->nbm", feats_s, tok2)
    mu = attn2.mean(-1, keepdims=True)
    var = ((attn2 - mu) ** 2).mean(-1, keepdims=True)
    attn2 = (attn2 - mu) / jnp.sqrt(var + 1e-5)
    attn2 = jax.nn.softmax(attn2 * C ** (-0.5), axis=-1)
    t2f2 = tok2[1:] @ params["wt2f2"].T + params["bt2f2"][0]
    d2 = jnp.einsum("nbm,mc->nbc", attn2[:, :, 1:], t2f2)
    d2 = (d2 + feats_s) @ params["wdf2"].T + params["bdf2"][0]

    delta = jnp.concatenate([d1, d2], -1) * scale
    return jnp.concatenate([cls_token, x + delta], axis=0)


# ----------------------------------------------------------------------------
# Deterministic parameter init (shapes from Reins.create_model).
# ----------------------------------------------------------------------------
def init_params(key, num_layers, embed_dims, patch_size, token_length):
    c = embed_dims // 4
    ks = jax.random.split(key, 10)

    def linear(k, out_f, in_f):
        k1, k2 = jax.random.split(k)
        bound = 1.0 / math.sqrt(in_f)
        w = jax.random.uniform(k1, (out_f, in_f), jnp.float32, -bound, bound)
        b = jax.random.uniform(k2, (1, out_f), jnp.float32, -bound, bound)
        return w, b

    val = math.sqrt(6.0 / float(3 * patch_size * patch_size + c))
    val2 = math.sqrt(6.0 / float(3 * patch_size * patch_size + 3 * c))
    tokens1 = jax.random.uniform(ks[0], (num_layers, token_length, c),
                                 jnp.float32, -val, val)
    tokens2 = jax.random.uniform(ks[1], (num_layers, token_length, 3 * c),
                                 jnp.float32, -val2, val2)
    wt2f1, bt2f1 = linear(ks[2], c, c)
    wdf1, bdf1 = linear(ks[3], c, c)
    wt2f2, bt2f2 = linear(ks[4], 3 * c, 3 * c)
    wdf2, bdf2 = linear(ks[5], 3 * c, 3 * c)
    return dict(
        tokens1=tokens1, tokens2=tokens2,
        wt2f1=wt2f1, bt2f1=bt2f1, wdf1=wdf1, bdf1=bdf1,
        wt2f2=wt2f2, bt2f2=bt2f2, wdf2=wdf2, bdf2=bdf2,
        scale=jnp.full((1, 1), 0.001, jnp.float32),
    )


if __name__ == "__main__":
    # Small synthetic config: embed_dims=32 (c=8), N=16 (h=w=4), B=2, 8 tokens.
    num_layers = 4
    embed_dims = 32
    patch_size = 16
    token_length = 8
    layer = 1
    B = 2
    N = 16  # h = w = 4

    key = jax.random.PRNGKey(0)
    kp, kx = jax.random.split(key)
    params = init_params(kp, num_layers, embed_dims, patch_size, token_length)
    feats = jax.random.normal(kx, (N + 1, B, embed_dims), jnp.float32)

    fwd = jax.jit(lambda p, f: reins_forward(p, f, layer))
    out = jax.block_until_ready(fwd(params, feats))

    ref = jax.block_until_ready(reins_forward_ref(params, feats, layer))
    assert out.shape == (N + 1, B, embed_dims)
    assert jnp.allclose(out, ref, rtol=1e-3, atol=1e-3), "mismatch vs reference"

    print("KERNEL_OK")
</pallas_src>

<mosaic_0001>
module attributes {stable_mosaic.version = 11 : i64} {
  func.func @_reins_fused_kernel(%arg0: i32, %arg1: memref<1x1xf32, #tpu.memory_space<smem>>, %arg2: memref<16x32xf32, #tpu.memory_space<vmem>>, %arg3: memref<4x16x8xbf16, #tpu.memory_space<vmem>>, %arg4: memref<128x8xbf16, #tpu.memory_space<vmem>>, %arg5: memref<128x24xbf16, #tpu.memory_space<vmem>>, %arg6: memref<128x8xbf16, #tpu.memory_space<vmem>>, %arg7: memref<128x24xbf16, #tpu.memory_space<vmem>>, %arg8: memref<8x8xbf16, #tpu.memory_space<vmem>>, %arg9: memref<1x8xf32, #tpu.memory_space<vmem>>, %arg10: memref<24x24xbf16, #tpu.memory_space<vmem>>, %arg11: memref<1x24xf32, #tpu.memory_space<vmem>>, %arg12: memref<16x32xf32, #tpu.memory_space<vmem>>) attributes {dimension_semantics = [#tpu.dimension_semantics<parallel>], iteration_bounds = array<i64: 2>, scalar_prefetch = 0 : i64, scratch_operands = 0 : i64, tpu.core_type = #tpu.core_type<tc>, window_params = [{transform_indices = @transform_0, window_bounds = array<i64: 1, 1>}, {transform_indices = @transform_1, window_bounds = array<i64: 16, 32>}, {transform_indices = @transform_2, window_bounds = array<i64: 4, 16, 8>}, {pipeline_mode = #tpu.pipeline_mode<synchronous>, transform_indices = @transform_3, window_bounds = array<i64: 128, 8>}, {pipeline_mode = #tpu.pipeline_mode<synchronous>, transform_indices = @transform_4, window_bounds = array<i64: 128, 24>}, {pipeline_mode = #tpu.pipeline_mode<synchronous>, transform_indices = @transform_5, window_bounds = array<i64: 128, 8>}, {pipeline_mode = #tpu.pipeline_mode<synchronous>, transform_indices = @transform_6, window_bounds = array<i64: 128, 24>}, {pipeline_mode = #tpu.pipeline_mode<synchronous>, transform_indices = @transform_7, window_bounds = array<i64: 8, 8>}, {pipeline_mode = #tpu.pipeline_mode<synchronous>, transform_indices = @transform_8, window_bounds = array<i64: 1, 8>}, {pipeline_mode = #tpu.pipeline_mode<synchronous>, transform_indices = @transform_9, window_bounds = array<i64: 24, 24>}, {pipeline_mode = #tpu.pipeline_mode<synchronous>, transform_indices = @transform_10, window_bounds = array<i64: 1, 24>}, {transform_indices = @transform_11, window_bounds = array<i64: 16, 32>}]} {
    %0 = tpu.iota {dimensions = array<i32: 1>} : vector<1x128xi32>
    %c8_i32 = arith.constant 8 : i32
    %1 = vector.broadcast %c8_i32 : i32 to vector<1x128xi32>
    %2 = arith.cmpi slt, %0, %1 : vector<1x128xi32>
    %cst = arith.constant 0.000000e+00 : f32
    %cst_0 = arith.constant -1.000000e+30 : f32
    %3 = vector.broadcast %cst : f32 to vector<1x128xf32>
    %4 = vector.broadcast %cst_0 : f32 to vector<1x128xf32>
    %5 = arith.select %2, %3, %4 : vector<1x128xi1>, vector<1x128xf32>
    %6 = arith.extui %2 : vector<1x128xi1> to vector<1x128xi32>
    %7 = arith.sitofp %6 : vector<1x128xi32> to vector<1x128xf32>
    %c0 = arith.constant 0 : index
    %c0_1 = arith.constant 0 : index
    %c0_2 = arith.constant 0 : index
    %8 = vector.load %arg3[%c0, %c0_1, %c0_2] : memref<4x16x8xbf16, #tpu.memory_space<vmem>>, vector<1x16x8xbf16>
    %9 = vector.shape_cast %8 : vector<1x16x8xbf16> to vector<16x8xbf16>
    %c1 = arith.constant 1 : index
    %c0_3 = arith.constant 0 : index
    %c0_4 = arith.constant 0 : index
    %10 = vector.load %arg3[%c1, %c0_3, %c0_4] : memref<4x16x8xbf16, #tpu.memory_space<vmem>>, vector<1x16x8xbf16>
    %11 = vector.shape_cast %10 : vector<1x16x8xbf16> to vector<16x8xbf16>
    %c2 = arith.constant 2 : index
    %c0_5 = arith.constant 0 : index
    %c0_6 = arith.constant 0 : index
    %12 = vector.load %arg3[%c2, %c0_5, %c0_6] : memref<4x16x8xbf16, #tpu.memory_space<vmem>>, vector<1x16x8xbf16>
    %13 = vector.shape_cast %12 : vector<1x16x8xbf16> to vector<16x8xbf16>
    %c3 = arith.constant 3 : index
    %c0_7 = arith.constant 0 : index
    %c0_8 = arith.constant 0 : index
    %14 = vector.load %arg3[%c3, %c0_7, %c0_8] : memref<4x16x8xbf16, #tpu.memory_space<vmem>>, vector<1x16x8xbf16>
    %15 = vector.shape_cast %14 : vector<1x16x8xbf16> to vector<16x8xbf16>
    %16 = arith.addf %9, %11 : vector<16x8xbf16>
    %17 = arith.addf %16, %13 : vector<16x8xbf16>
    %18 = arith.addf %17, %15 : vector<16x8xbf16>
    %cst_9 = arith.constant 5.000000e-01 : bf16
    %19 = vector.broadcast %cst_9 : bf16 to vector<16x8xbf16>
    %20 = arith.mulf %19, %18 : vector<16x8xbf16>
    %cst_10 = arith.constant 0.000000e+00 : bf16
    %21 = vector.broadcast %cst_10 : bf16 to vector<16x8xbf16>
    %22 = arith.subf %21, %9 : vector<16x8xbf16>
    %23 = arith.addf %22, %11 : vector<16x8xbf16>
    %24 = arith.subf %23, %13 : vector<16x8xbf16>
    %25 = arith.addf %24, %15 : vector<16x8xbf16>
    %cst_11 = arith.constant 5.000000e-01 : bf16
    %26 = vector.broadcast %cst_11 : bf16 to vector<16x8xbf16>
    %27 = arith.mulf %26, %25 : vector<16x8xbf16>
    %cst_12 = arith.constant 0.000000e+00 : bf16
    %28 = vector.broadcast %cst_12 : bf16 to vector<16x8xbf16>
    %29 = arith.subf %28, %9 : vector<16x8xbf16>
    %30 = arith.subf %29, %11 : vector<16x8xbf16>
    %31 = arith.addf %30, %13 : vector<16x8xbf16>
    %32 = arith.addf %31, %15 : vector<16x8xbf16>
    %cst_13 = arith.constant 5.000000e-01 : bf16
    %33 = vector.broadcast %cst_13 : bf16 to vector<16x8xbf16>
    %34 = arith.mulf %33, %32 : vector<16x8xbf16>
    %35 = arith.subf %9, %11 : vector<16x8xbf16>
    %36 = arith.subf %35, %13 : vector<16x8xbf16>
    %37 = arith.addf %36, %15 : vector<16x8xbf16>
    %cst_14 = arith.constant 5.000000e-01 : bf16
    %38 = vector.broadcast %cst_14 : bf16 to vector<16x8xbf16>
    %39 = arith.mulf %38, %37 : vector<16x8xbf16>
    %40 = tpu.concatenate %27, %34, %39 in 1 : vector<16x8xbf16>, vector<16x8xbf16>, vector<16x8xbf16> -> vector<16x24xbf16>
    %c0_15 = arith.constant 0 : index
    %c0_16 = arith.constant 0 : index
    %41 = memref.load %arg1[%c0_15, %c0_16] : memref<1x1xf32, #tpu.memory_space<smem>>
    %c0_17 = arith.constant 0 : index
    %c0_18 = arith.constant 0 : index
    %42 = vector.load %arg4[%c0_17, %c0_18] : memref<128x8xbf16, #tpu.memory_space<vmem>>, vector<128x8xbf16>
    %cst_19 = arith.constant dense<0.000000e+00> : vector<16x128xf32>
    %43 = tpu.matmul %20, %42, %cst_19 {dimension_numbers = #tpu.dot_dimension_numbers<[1], [1], [0], [0], [0, 0, 1, 0], [], []>} : vector<16x8xbf16>, vector<128x8xbf16>, vector<16x128xf32> -> vector<16x128xf32>
    %cst_20 = arith.constant 0.176776692 : f32
    %44 = vector.broadcast %cst_20 : f32 to vector<16x128xf32>
    %45 = arith.mulf %43, %44 : vector<16x128xf32>
    %46 = vector.broadcast %5 : vector<1x128xf32> to vector<16x128xf32>
    %47 = arith.addf %45, %46 : vector<16x128xf32>
    %cst_21 = arith.constant dense<0xFF800000> : vector<16xf32>
    %48 = vector.multi_reduction <maximumf>, %47, %cst_21 [1] : vector<16x128xf32> to vector<16xf32>
    %49 = vector.shape_cast %48 : vector<16xf32> to vector<16x1xf32>
    %50 = vector.broadcast %49 : vector<16x1xf32> to vector<16x128xf32>
    %51 = arith.subf %47, %50 : vector<16x128xf32>
    %52 = math.exp %51 : vector<16x128xf32>
    %cst_22 = arith.constant dense<0.000000e+00> : vector<16xf32>
    %53 = vector.multi_reduction <add>, %52, %cst_22 [1] : vector<16x128xf32> to vector<16xf32>
    %54 = vector.shape_cast %53 : vector<16xf32> to vector<16x1xf32>
    %55 = tpu.reciprocal %54 {approx = true} : vector<16x1xf32> -> vector<16x1xf32>
    %56 = vector.broadcast %55 : vector<16x1xf32> to vector<16x128xf32>
    %57 = arith.mulf %52, %56 : vector<16x128xf32>
    %58 = arith.truncf %57 : vector<16x128xf32> to vector<16x128xbf16>
    %c0_23 = arith.constant 0 : index
    %c0_24 = arith.constant 0 : index
    %59 = vector.load %arg6[%c0_23, %c0_24] : memref<128x8xbf16, #tpu.memory_space<vmem>>, vector<128x8xbf16>
    %cst_25 = arith.constant dense<0.000000e+00> : vector<16x8xf32>
    %60 = tpu.matmul %58, %59, %cst_25 {dimension_numbers = #tpu.dot_dimension_numbers<[1], [0], [0], [1], [0, 0, 1, 1], [], []>} : vector<16x128xbf16>, vector<128x8xbf16>, vector<16x8xf32> -> vector<16x8xf32>
    %61 = arith.extf %20 : vector<16x8xbf16> to vector<16x8xf32>
    %62 = arith.addf %60, %61 : vector<16x8xf32>
    %63 = arith.truncf %62 : vector<16x8xf32> to vector<16x8xbf16>
    %c0_26 = arith.constant 0 : index
    %c0_27 = arith.constant 0 : index
    %64 = vector.load %arg8[%c0_26, %c0_27] : memref<8x8xbf16, #tpu.memory_space<vmem>>, vector<8x8xbf16>
    %cst_28 = arith.constant dense<0.000000e+00> : vector<16x8xf32>
    %65 = tpu.matmul %63, %64, %cst_28 {dimension_numbers = #tpu.dot_dimension_numbers<[1], [1], [0], [0], [0, 0, 1, 0], [], []>} : vector<16x8xbf16>, vector<8x8xbf16>, vector<16x8xf32> -> vector<16x8xf32>
    %c0_29 = arith.constant 0 : index
    %c0_30 = arith.constant 0 : index
    %66 = vector.load %arg9[%c0_29, %c0_30] : memref<1x8xf32, #tpu.memory_space<vmem>>, vector<1x8xf32>
    %67 = vector.broadcast %66 : vector<1x8xf32> to vector<16x8xf32>
    %68 = arith.addf %65, %67 : vector<16x8xf32>
    %c0_31 = arith.constant 0 : index
    %c0_32 = arith.constant 0 : index
    %69 = vector.load %arg5[%c0_31, %c0_32] : memref<128x24xbf16, #tpu.memory_space<vmem>>, vector<128x24xbf16>
    %cst_33 = arith.constant dense<0.000000e+00> : vector<16x128xf32>
    %70 = tpu.matmul %40, %69, %cst_33 {dimension_numbers = #tpu.dot_dimension_numbers<[1], [1], [0], [0], [0, 0, 1, 0], [], []>} : vector<16x24xbf16>, vector<128x24xbf16>, vector<16x128xf32> -> vector<16x128xf32>
    %71 = vector.broadcast %7 : vector<1x128xf32> to vector<16x128xf32>
    %72 = arith.mulf %70, %71 : vector<16x128xf32>
    %cst_34 = arith.constant dense<0.000000e+00> : vector<16xf32>
    %73 = vector.multi_reduction <add>, %72, %cst_34 [1] : vector<16x128xf32> to vector<16xf32>
    %74 = vector.shape_cast %73 : vector<16xf32> to vector<16x1xf32>
    %cst_35 = arith.constant 1.250000e-01 : f32
    %75 = vector.broadcast %cst_35 : f32 to vector<16x1xf32>
    %76 = arith.mulf %74, %75 : vector<16x1xf32>
    %77 = vector.broadcast %76 : vector<16x1xf32> to vector<16x128xf32>
    %78 = arith.subf %70, %77 : vector<16x128xf32>
    %79 = vector.broadcast %7 : vector<1x128xf32> to vector<16x128xf32>
    %80 = arith.mulf %78, %79 : vector<16x128xf32>
    %81 = arith.mulf %80, %80 : vector<16x128xf32>
    %cst_36 = arith.constant dense<0.000000e+00> : vector<16xf32>
    %82 = vector.multi_reduction <add>, %81, %cst_36 [1] : vector<16x128xf32> to vector<16xf32>
    %83 = vector.shape_cast %82 : vector<16xf32> to vector<16x1xf32>
    %cst_37 = arith.constant 1.250000e-01 : f32
    %84 = vector.broadcast %cst_37 : f32 to vector<16x1xf32>
    %85 = arith.mulf %83, %84 : vector<16x1xf32>
    %86 = vector.broadcast %76 : vector<16x1xf32> to vector<16x128xf32>
    %87 = arith.subf %70, %86 : vector<16x128xf32>
    %cst_38 = arith.constant 9.99999974E-6 : f32
    %88 = vector.broadcast %cst_38 : f32 to vector<16x1xf32>
    %89 = arith.addf %85, %88 : vector<16x1xf32>
    %90 = math.rsqrt %89 : vector<16x1xf32>
    %91 = vector.broadcast %90 : vector<16x1xf32> to vector<16x128xf32>
    %92 = arith.mulf %87, %91 : vector<16x128xf32>
    %cst_39 = arith.constant 0.176776692 : f32
    %93 = vector.broadcast %cst_39 : f32 to vector<16x128xf32>
    %94 = arith.mulf %92, %93 : vector<16x128xf32>
    %95 = vector.broadcast %5 : vector<1x128xf32> to vector<16x128xf32>
    %96 = arith.addf %94, %95 : vector<16x128xf32>
    %cst_40 = arith.constant dense<0xFF800000> : vector<16xf32>
    %97 = vector.multi_reduction <maximumf>, %96, %cst_40 [1] : vector<16x128xf32> to vector<16xf32>
    %98 = vector.shape_cast %97 : vector<16xf32> to vector<16x1xf32>
    %99 = vector.broadcast %98 : vector<16x1xf32> to vector<16x128xf32>
    %100 = arith.subf %96, %99 : vector<16x128xf32>
    %101 = math.exp %100 : vector<16x128xf32>
    %cst_41 = arith.constant dense<0.000000e+00> : vector<16xf32>
    %102 = vector.multi_reduction <add>, %101, %cst_41 [1] : vector<16x128xf32> to vector<16xf32>
    %103 = vector.shape_cast %102 : vector<16xf32> to vector<16x1xf32>
    %104 = tpu.reciprocal %103 {approx = true} : vector<16x1xf32> -> vector<16x1xf32>
    %105 = vector.broadcast %104 : vector<16x1xf32> to vector<16x128xf32>
    %106 = arith.mulf %101, %105 : vector<16x128xf32>
    %107 = arith.truncf %106 : vector<16x128xf32> to vector<16x128xbf16>
    %c0_42 = arith.constant 0 : index
    %c0_43 = arith.constant 0 : index
    %108 = vector.load %arg7[%c0_42, %c0_43] : memref<128x24xbf16, #tpu.memory_space<vmem>>, vector<128x24xbf16>
    %cst_44 = arith.constant dense<0.000000e+00> : vector<16x24xf32>
    %109 = tpu.matmul %107, %108, %cst_44 {dimension_numbers = #tpu.dot_dimension_numbers<[1], [0], [0], [1], [0, 0, 1, 1], [], []>} : vector<16x128xbf16>, vector<128x24xbf16>, vector<16x24xf32> -> vector<16x24xf32>
    %110 = arith.extf %40 : vector<16x24xbf16> to vector<16x24xf32>
    %111 = arith.addf %109, %110 : vector<16x24xf32>
    %112 = arith.truncf %111 : vector<16x24xf32> to vector<16x24xbf16>
    %c0_45 = arith.constant 0 : index
    %c0_46 = arith.constant 0 : index
    %113 = vector.load %arg10[%c0_45, %c0_46] : memref<24x24xbf16, #tpu.memory_space<vmem>>, vector<24x24xbf16>
    %cst_47 = arith.constant dense<0.000000e+00> : vector<16x24xf32>
    %114 = tpu.matmul %112, %113, %cst_47 {dimension_numbers = #tpu.dot_dimension_numbers<[1], [1], [0], [0], [0, 0, 1, 0], [], []>} : vector<16x24xbf16>, vector<24x24xbf16>, vector<16x24xf32> -> vector<16x24xf32>
    %c0_48 = arith.constant 0 : index
    %c0_49 = arith.constant 0 : index
    %115 = vector.load %arg11[%c0_48, %c0_49] : memref<1x24xf32, #tpu.memory_space<vmem>>, vector<1x24xf32>
    %116 = vector.broadcast %115 : vector<1x24xf32> to vector<16x24xf32>
    %117 = arith.addf %114, %116 : vector<16x24xf32>
    %c0_50 = arith.constant 0 : index
    %c0_51 = arith.constant 0 : index
    %118 = vector.load %arg2[%c0_50, %c0_51] : memref<16x32xf32, #tpu.memory_space<vmem>>, vector<16x32xf32>
    %119 = tpu.concatenate %68, %117 in 1 : vector<16x8xf32>, vector<16x24xf32> -> vector<16x32xf32>
    %120 = vector.broadcast %41 : f32 to vector<16x32xf32>
    %121 = arith.mulf %120, %119 : vector<16x32xf32>
    %122 = arith.addf %118, %121 : vector<16x32xf32>
    %c0_52 = arith.constant 0 : index
    %c0_53 = arith.constant 0 : index
    %123 = vector.load %arg12[%c0_52, %c0_53] : memref<16x32xf32, #tpu.memory_space<vmem>>, vector<16x32xf32>
    tpu.vector_store %arg12[%c0_52, %c0_53], %122 {strides = array<i32>} : memref<16x32xf32, #tpu.memory_space<vmem>>, vector<16x32xf32>,
    return
  }
  func.func @transform_0(%arg0: i32) -> (i32, i32) {
    %c0_i32 = arith.constant 0 : i32
    %c0_i32_0 = arith.constant 0 : i32
    %c0_i32_1 = arith.constant 0 : i32
    return %c0_i32, %c0_i32_0 : i32, i32
  }
  func.func @transform_1(%arg0: i32) -> (i32, i32) {
    %c0_i32 = arith.constant 0 : i32
    %c0_i32_0 = arith.constant 0 : i32
    return %arg0, %c0_i32 : i32, i32
  }
  func.func @transform_2(%arg0: i32) -> (i32, i32, i32) {
    %c0_i32 = arith.constant 0 : i32
    %c0_i32_0 = arith.constant 0 : i32
    %c0_i32_1 = arith.constant 0 : i32
    return %c0_i32, %arg0, %c0_i32_0 : i32, i32, i32
  }
  func.func @transform_3(%arg0: i32) -> (i32, i32) {
    %c0_i32 = arith.constant 0 : i32
    %c0_i32_0 = arith.constant 0 : i32
    %c0_i32_1 = arith.constant 0 : i32
    return %c0_i32, %c0_i32_0 : i32, i32
  }
  func.func @transform_4(%arg0: i32) -> (i32, i32) {
    %c0_i32 = arith.constant 0 : i32
    %c0_i32_0 = arith.constant 0 : i32
    %c0_i32_1 = arith.constant 0 : i32
    return %c0_i32, %c0_i32_0 : i32, i32
  }
  func.func @transform_5(%arg0: i32) -> (i32, i32) {
    %c0_i32 = arith.constant 0 : i32
    %c0_i32_0 = arith.constant 0 : i32
    %c0_i32_1 = arith.constant 0 : i32
    return %c0_i32, %c0_i32_0 : i32, i32
  }
  func.func @transform_6(%arg0: i32) -> (i32, i32) {
    %c0_i32 = arith.constant 0 : i32
    %c0_i32_0 = arith.constant 0 : i32
    %c0_i32_1 = arith.constant 0 : i32
    return %c0_i32, %c0_i32_0 : i32, i32
  }
  func.func @transform_7(%arg0: i32) -> (i32, i32) {
    %c0_i32 = arith.constant 0 : i32
    %c0_i32_0 = arith.constant 0 : i32
    %c0_i32_1 = arith.constant 0 : i32
    return %c0_i32, %c0_i32_0 : i32, i32
  }
  func.func @transform_8(%arg0: i32) -> (i32, i32) {
    %c0_i32 = arith.constant 0 : i32
    %c0_i32_0 = arith.constant 0 : i32
    %c0_i32_1 = arith.constant 0 : i32
    return %c0_i32, %c0_i32_0 : i32, i32
  }
  func.func @transform_9(%arg0: i32) -> (i32, i32) {
    %c0_i32 = arith.constant 0 : i32
    %c0_i32_0 = arith.constant 0 : i32
    %c0_i32_1 = arith.constant 0 : i32
    return %c0_i32, %c0_i32_0 : i32, i32
  }
  func.func @transform_10(%arg0: i32) -> (i32, i32) {
    %c0_i32 = arith.constant 0 : i32
    %c0_i32_0 = arith.constant 0 : i32
    %c0_i32_1 = arith.constant 0 : i32
    return %c0_i32, %c0_i32_0 : i32, i32
  }
  func.func @transform_11(%arg0: i32) -> (i32, i32) {
    %c0_i32 = arith.constant 0 : i32
    %c0_i32_0 = arith.constant 0 : i32
    return %arg0, %c0_i32 : i32, i32
  }
}

</mosaic_0001>

<bundles_post_ra>
// kernel: _lambda_.1
= control target key start
LH: loop header
LB: loop body
LE: loop exit
PB: predicated region body
PF: predicated region fallthrough
CT: control target
= control target key end

     0   :  { %s2027_s0 = inlined_call_operand.<no memory space> [shape: f32[1,1], index: 0, kind: input, shape index: {}]   ;;  %s2028_s1 = inlined_call_operand.vmem [shape: f32[32,32], index: 1, kind: input, shape index: {}]   ;;  %s2029_s2 = inlined_call_operand.vmem [shape: bf16[4,32,8], index: 2, kind: input, shape index: {}]   ;;  %s2030_s3 = inlined_call_operand.vmem [shape: bf16[128,8], index: 3, kind: input, shape index: {}]   ;;  %s2031_s4 = inlined_call_operand.vmem [shape: bf16[128,24], index: 4, kind: input, shape index: {}]   ;;  %s2032_s5 = inlined_call_operand.vmem [shape: bf16[128,8], index: 5, kind: input, shape index: {}]   ;;  %s2033_s6 = inlined_call_operand.vmem [shape: bf16[128,24], index: 6, kind: input, shape index: {}]   ;;  %s2034_s7 = inlined_call_operand.vmem [shape: bf16[8,8], index: 7, kind: input, shape index: {}]   ;;  %s2035_s8 = inlined_call_operand.vmem [shape: f32[1,8], index: 8, kind: input, shape index: {}]   ;;  %s2036_s9 = inlined_call_operand.vmem [shape: bf16[24,24], index: 9, kind: input, shape index: {}]   ;;  %s2037_s10 = inlined_call_operand.vmem [shape: f32[1,24], index: 10, kind: input, shape index: {}]   ;;  %s2038_s11 = inlined_call_operand.vmem [shape: f32[32,32], index: 11, kind: output, shape index: {}]  }
   0x1   :  { %16 = sst [smem:[#allocation2]] %s2027_s0 }
   0x2   :  { %s1698_s19 = smov 0   ;;  %s1700_s20 = smov 0  }
   0x3   :  { %s1702_s21 = smov 0  }
   0x4 LB: > { %s1321_s0 = sadd.s32 4294967295, %s1628_s21   ;;  %s1715_s22 = sadd.s32 1, %s1628_s21   ;;  %s1628_s21 = sphi %s1702_s21, %s2041_s21   ;;  %s1624_s20 = sphi %s1700_s20, %s2040_s20   ;;  %s1620_s19 = sphi %s1698_s19, %s2039_s19  }
   0x5   : > { %s73_s23 = ssub.s32 %s1628_s21, %s1715_s22  ;;  %s76_s24 = sadd.s32 1, %s1624_s20 }
   0x6   : > { %p74_p0 = scmp.eq.s32.totalorder %s73_s23, 0  ;;  %p83_p1 = scmp.ne.s32.totalorder %s1624_s20, %s1620_s19 }
   0x7   : > { %p84_p2 = scmp.eq.s32.totalorder %s1628_s21, 0  ;;  %p1324_p4 = scmp.ge.s32.totalorder %s1628_s21, 2 }
   0x8   : > { %s1724_s25 = scalar_select %p74_p0, %s1624_s20, %s76_s24  }
   0x9   : > { %p85_p3 = por %p84_p2, %p83_p1  ;;  %330 = sbr.rel (%p1324_p4) target bundleno = 23 (0x17), region = 52 }
  0x10   : > { %342 = sbr.rel (!%p85_p3) target bundleno = 23 (0x17), region = 60  ;;  %s344_s26 = sand.u32 (%p85_p3), 1, %s1624_s20  }
  0x11   : > { %s1387_s27 = sshll.u32 (%p85_p3), %s1628_s21, 3  ;;  %s1325_s28 = sshll.u32 (%p85_p3), %s344_s26, 5 }
  0x12   : > { %s349_s12 = scalar_lea.vmem (%p85_p3), %s2029_s2, %s1387_s27  ;;  %s346_s13 = scalar_lea.vmem (%p85_p3), [#allocation3], %s1325_s28 }
  0x13   : > { %v365_v0 = vld [vmem:[%s349_s12] sm:$0xff] (%p85_p3)   ;;  %v369_v1 = vld [vmem:[%s349_s12 + $0x10] sm:$0xff] (%p85_p3)  }
  0x14   : > { %v373_v2 = vld [vmem:[%s349_s12 + $0x20] sm:$0xff] (%p85_p3)   ;;  %366 = vst [vmem:[%s346_s13] sm:$0xff] (%p85_p3), %v365_v0   ;;  %370 = vst [vmem:[%s346_s13 + $0x8] sm:$0xff] (%p85_p3), %v369_v1   ;;  %v377_v3 = vld [vmem:[%s349_s12 + $0x30] sm:$0xff] (%p85_p3)  }
  0x15   : > { %374 = vst [vmem:[%s346_s13 + $0x10] sm:$0xff] (%p85_p3), %v373_v2   ;;  %378 = vst [vmem:[%s346_s13 + $0x18] sm:$0xff] (%p85_p3), %v377_v3  }
  0x17 PF: > { %p1328_p5 = scmp.ge.s32.totalorder %s1628_s21, 1  ;;  %p418_p6 = scmp.lt.s32.totalorder %s1628_s21, 3 }
  0x19   : > { %p419_p7 = pnand %p1328_p5, %p418_p6 }
  0x1a   : > { %vm554_vm0 = vcmask (!%p419_p7), 64512   ;;  %v1630_v4 = vmov (!%p419_p7), 0.0   ;;  %v1552_v5 = vld [vmem:[%s2030_s3] sm:$0xff] (!%p419_p7)   ;;  %vm1631_vm1 = vmmov (!%p419_p7), 0   ;;  %v1553_v7 = vld [vmem:[%s2030_s3 + $0x8] sm:$0xff] (!%p419_p7)   ;;  %v1554_v8 = vld [vmem:[%s2030_s3 + $0x10] sm:$0xff] (!%p419_p7)   ;;  %v484_v38 = vlaneseq (!%p419_p7) }
  0x1b   : > { %422 = sbr.rel (%p419_p7) target bundleno = 2306 (0x902), region = 101  ;;  %1429 = vmatprep.subr.bf16.mxu0 (!%p419_p7), %v1630_v4  ;;  %1449 = vmatprep.subr.bf16.mxu1 (!%p419_p7), %v1630_v4  ;;  %v628_v6 = vsel (!%p419_p7), %vm554_vm0, %v1552_v5, 0  ;;  %v631_v9 = vsel (!%p419_p7), %vm554_vm0, %v1553_v7, 0  ;;  %v634_v10 = vsel (!%p419_p7), %vm554_vm0, %v1554_v8, 0  ;;  %v1555_v11 = vld [vmem:[%s2030_s3 + $0x18] sm:$0xff] (!%p419_p7)   ;;  %v1556_v13 = vld [vmem:[%s2030_s3 + $0x20] sm:$0xff] (!%p419_p7)  }
  0x1c   : > { %1445 = vmatprep.mubr.msk.bf16.mxu0 (!%p419_p7), %vm1631_vm1, %v1630_v4  ;;  %1465 = vmatprep.mubr.msk.bf16.mxu1 (!%p419_p7), %vm1631_vm1, %v1630_v4  ;;  %v637_v12 = vsel (!%p419_p7), %vm554_vm0, %v1555_v11, 0  ;;  %v640_v14 = vsel (!%p419_p7), %vm554_vm0, %v1556_v13, 0  ;;  %s425_s29 = sand.u32 (!%p419_p7), 1, %s1620_s19   ;;  %v1557_v15 = vld [vmem:[%s2030_s3 + $0x28] sm:$0xff] (!%p419_p7)   ;;  %v1558_v21 = vld [vmem:[%s2030_s3 + $0x30] sm:$0xff] (!%p419_p7)   ;;  %v1559_v31 = vld [vmem:[%s2030_s3 + $0x38] sm:$0xff] (!%p419_p7)  }
  0x1d   : > { %1430 = vmatpush3.bf16.xpose.msra.mxu0 (!%p419_p7), %v628_v6  ;;  %s1329_s13 = sshll.u32 (!%p419_p7), %s425_s29, 5  ;;  %v643_v16 = vsel (!%p419_p7), %vm554_vm0, %v1557_v15, 0  ;;  %v646_v26 = vsel (!%p419_p7), %vm554_vm0, %v1558_v21, 0  ;;  %v649_v34 = vsel (!%p419_p7), %vm554_vm0, %v1559_v31, 0  ;;  %v1814_v39 = vand.u32 (!%p419_p7), 127, %v484_v38  ;;  %v1560_v50 = vld [vmem:[%s2032_s5] sm:$0xff] (!%p419_p7)  }
  0x1e   : > { %1431 = vmatprep.subr.bf16.mxu0 (!%p419_p7), %v1630_v4  ;;  %s427_s14 = scalar_lea.vmem (!%p419_p7), [#allocation3], %s1329_s13  ;;  %v1632_v41 = vmov (!%p419_p7), -1e+30   ;;  %1450 = vmatpush3.bf16.msra.mxu1 (!%p419_p7), %v1560_v50  ;;  %v1561_v51 = vld [vmem:[%s2032_s5 + $0x8] sm:$0xff] (!%p419_p7)   ;;  %v1562_v52 = vld [vmem:[%s2032_s5 + $0x10] sm:$0xff] (!%p419_p7)   ;;  %v1563_v61 = vld [vmem:[%s2032_s5 + $0x18] sm:$0xff] (!%p419_p7)  }
  0x1f   : > { %v1770_v17 = vld [vmem:[%s427_s14] sm:$0xf] (!%p419_p7)  ;;  %v1772_v18 = vld [vmem:[%s427_s14 + $0x4] sm:$0xf] (!%p419_p7)  ;;  %v1774_v19 = vld [vmem:[%s427_s14 + $0x8] sm:$0xf] (!%p419_p7)  ;;  %1451 = vmatprep.subr.bf16.mxu1 (!%p419_p7), %v1630_v4 }
  0x20   : > { %v1776_v20 = vld [vmem:[%s427_s14 + $0xc] sm:$0xf] (!%p419_p7)  ;;  %v501_v22 = vadd.bf16 (!%p419_p7), %v1774_v19, %v1770_v17  ;;  %v1786_v24 = vld [vmem:[%s427_s14 + $0x10] sm:$0xf] (!%p419_p7)  ;;  %v1788_v25 = vld [vmem:[%s427_s14 + $0x14] sm:$0xf] (!%p419_p7)  ;;  %v527_v5 = vsub.bf16 (!%p419_p7), %v1770_v17, %v1774_v19 }
  0x21   : > { %v502_v23 = vadd.bf16 (!%p419_p7), %v1776_v20, %v1772_v18  ;;  %v1793_v29 = vld [vmem:[%s427_s14 + $0x18] sm:$0xf] (!%p419_p7)  ;;  %v1795_v30 = vld [vmem:[%s427_s14 + $0x1c] sm:$0xf] (!%p419_p7)  ;;  %vm486_vm2 = vcmp.lt.s32.totalorder (!%p419_p7), %v1814_v39, 8  ;;  %v1564_v62 = vld [vmem:[%s2032_s5 + $0x20] sm:$0xff] (!%p419_p7)   ;;  %v528_v6 = vsub.bf16 (!%p419_p7), %v1772_v18, %v1776_v20 }
  0x22   : > { %v503_v27 = vadd.bf16 %v1786_v24, %v501_v22  ;;  %v1819_v42 = vsel %vm486_vm2, 0.0, %v1632_v41  ;;  %1452 = vmatpush3.bf16.msra.mxu1 %v1561_v51  ;;  %v1565_v63 = vld [vmem:[%s2032_s5 + $0x28] sm:$0xff]   ;;  %v1566_v0 = vld [vmem:[%s2032_s5 + $0x30] sm:$0xff]   ;;  %v1567_v1 = vld [vmem:[%s2032_s5 + $0x38] sm:$0xff]   ;;  %v509_v2 = vsub.bf16 0, %v1770_v17  ;;  %v510_v3 = vsub.bf16 0, %v1772_v18 }
  0x23   : > { %v504_v28 = vadd.bf16 %v1788_v25, %v502_v23  ;;  %1453 = vmatprep.subr.bf16.mxu1 %v1630_v4  ;;  %s1633_s23 = smov 16   ;;  %s1634_s24 = smov 8   ;;  %vm934_vm3 = vcmask 195584   ;;  %v1575_v18 = vld [vmem:[%s2031_s4 + $0x38] sm:$0xff]   ;;  %vm558_vm4 = vcmask 130048   ;;  %vm1244_vm5 = vcmask 261120  }
  0x24   : > { %v505_v32 = vadd.bf16 %v1793_v29, %v503_v27  ;;  %v519_v7 = vsub.bf16 %v509_v2, %v1774_v19  ;;  %v520_v8 = vsub.bf16 %v510_v3, %v1776_v20  ;;  %s1330_s18 = sshll.u32 %s1321_s0, 1 }
  0x25   : > { %1432 = vmatpush3.bf16.xpose.msra.mxu0 %v631_v9  ;;  %v506_v33 = vadd.bf16 %v1795_v30, %v504_v28  ;;  %v529_v9 = vsub.bf16 %v527_v5, %v1786_v24  ;;  %p470_p8 = scmp.lt.s32.totalorder %s1330_s18, 3 }
  0x26   : > { %1433 = vmatprep.subr.bf16.mxu0 %v1630_v4  ;;  %v1804_v35 = vmul.bf16 1056980736, %v505_v32  ;;  %1454 = vmatpush3.bf16.msra.mxu1 %v1562_v52  ;;  %v521_v11 = vadd.bf16 %v1786_v24, %v519_v7 }
  0x27   : > { %v1806_v36 = vmul.bf16 1056980736, %v506_v33  ;;  %1455 = vmatprep.subr.bf16.mxu1 %v1630_v4  ;;  %v531_v13 = vadd.bf16 %v1793_v29, %v529_v9  ;;  %s2043_s18 = smov (!%p470_p8, %s1330_s18), 3 }
  0x28   : > { %v523_v15 = vadd.bf16 %v1793_v29, %v521_v11  ;;  %s1331_s26 = sshll.u32 %s2043_s18, 3 }
  0x29   : > { %v1344_v37 = vcombine.low %v1804_v35, %v1806_v36  ;;  %v533_v21 = vmul.bf16 1056980736, %v531_v13  ;;  %v1334_v13 = vsel %vm486_vm2, 1.0, %v1630_v4  ;;  %s473_s12 = scalar_lea.vmem %s2028_s1, %s1331_s26 }
  0x2a   : > { %1456 = vmatpush3.bf16.msra.mxu1 %v1563_v61  ;;  %v525_v23 = vmul.bf16 1056980736, %v523_v15  ;;  %v1573_v61 = vld [vmem:[%s2031_s4 + $0x28] sm:$0xff]  }
  0x2b   : > { %1457 = vmatprep.subr.bf16.mxu1 %v1630_v4 }
  0x2d   : > { %1434 = vmatpush3.bf16.xpose.msra.mxu0 %v634_v10  ;;  %v530_v10 = vsub.bf16 %v528_v6, %v1788_v25 }
  0x2e   : > { %1435 = vmatprep.subr.bf16.mxu0 %v1630_v4  ;;  %1458 = vmatpush3.bf16.msra.mxu1 %v1564_v62  ;;  %v953_v62 = vsel %vm934_vm3, %v1573_v61, 0 }
  0x2f   : > { %1459 = vmatprep.subr.bf16.mxu1 %v1630_v4 }
  0x32   : > { %1460 = vmatpush3.bf16.msra.mxu1 %v1565_v63  ;;  %v511_v63 = vadd.bf16 %v1774_v19, %v509_v2 }
  0x33   : > { %1461 = vmatprep.subr.bf16.mxu1 %v1630_v4 }
  0x34   : > { %v513_v5 = vsub.bf16 %v511_v63, %v1786_v24 }
  0x35   : > { %1436 = vmatpush3.bf16.xpose.msra.mxu0 %v637_v12  ;;  %v522_v12 = vadd.bf16 %v1788_v25, %v520_v8 }
  0x36   : > { %1437 = vmatprep.subr.bf16.mxu0 %v1630_v4  ;;  %1462 = vmatpush3.bf16.msra.mxu1 %v1566_v0  ;;  %v512_v0 = vadd.bf16 %v1776_v20, %v510_v3  ;;  %v515_v17 = vadd.bf16 %v1793_v29, %v513_v5  ;;  %v959_v3 = vsel %vm934_vm3, %v1575_v18, 0  ;;  %v1582_v5 = vld [vmem:[%s2033_s6 + $0x30] sm:$0xff]   ;;  %v1584_v18 = vld [vmem:[%s2036_s9] sm:$0xff]  }
  0x37   : > { %1463 = vmatprep.subr.bf16.mxu1 %v1630_v4 }
  0x38   : > { %v514_v6 = vsub.bf16 %v512_v0, %v1788_v25  ;;  %v517_v20 = vmul.bf16 1056980736, %v515_v17  ;;  %v1580_v0 = vld [vmem:[%s2033_s6 + $0x20] sm:$0xff]  }
  0x3a   : > { %1464 = vmatpush3.bf16.msra.mxu1 %v1567_v1  ;;  %v1574_v1 = vld [vmem:[%s2031_s4 + $0x30] sm:$0xff]   ;;  %v516_v19 = vadd.bf16 %v1795_v30, %v514_v6  ;;  %v1583_v6 = vld [vmem:[%s2033_s6 + $0x38] sm:$0xff]  }
  0x3b   : > { %1469 = vmatprep.subr.bf16.mxu1 %v1630_v4  ;;  %v956_v7 = vsel %vm934_vm3, %v1574_v1, 0  ;;  %v1581_v1 = vld [vmem:[%s2033_s6 + $0x28] sm:$0xff]  }
  0x3c   : > { %v518_v2 = vmul.bf16 1056980736, %v516_v19 }
  0x3d   : > { %1438 = vmatpush3.bf16.xpose.msra.mxu0 %v640_v14  ;;  %v532_v14 = vadd.bf16 %v1795_v30, %v530_v10 }
  0x3e   : > { %1439 = vmatprep.subr.bf16.mxu0 %v1630_v4  ;;  %v1341_v24 = vcombine.low %v517_v20, %v518_v2 }
  0x3f   : > { %v534_v22 = vmul.bf16 1056980736, %v532_v14 }
  0x41   : > { %v1343_v27 = vcombine.low %v533_v21, %v534_v22 }
  0x45   : > { %1440 = vmatpush3.bf16.xpose.msra.mxu0 %v643_v16  ;;  %v524_v16 = vadd.bf16 %v1795_v30, %v522_v12 }
  0x46   : > { %1441 = vmatprep.subr.bf16.mxu0 %v1630_v4 }
  0x4d   : > { %1442 = vmatpush3.bf16.xpose.msra.mxu0 %v646_v26  ;;  %v526_v26 = vmul.bf16 1056980736, %v524_v16 }
  0x4e   : > { %1443 = vmatprep.subr.bf16.mxu0 %v1630_v4 }
  0x4f   : > { %v1342_v28 = vcombine.low %v525_v23, %v526_v26 }
  0x55   : > { %1444 = vmatpush3.bf16.xpose.msra.mxu0 %v649_v34 }
  0x56   : > { %1495 = vmatprep.subr.bf16.mxu0 %v1630_v4 }
  0x5c   : > { %1446 = vmatmul.mubr.msk.bf16.vlgmr.msra.gmra.mrb[0].mxu0 %vm554_vm0, %v1344_v37  ;;  %v823_v37 = vld [vmem:[%s2034_s7] sm:$0xf] }
  0x5d   : > { %1511 = vmatprep.mubr.msk.bf16.mxu0 %vm1631_vm1, %v1630_v4 }
 0x12f   : > { %v685_v40 = vpop.f32.mrb[0].mxu0 }
 0x130   : > { %v692_v43 = vmul.f32 0.17677669, %v685_v40  ;;  %v1447_v44 = vpop.f32.mrb[1].mxu0 }
 0x131   : > { %v688_v45 = vpop.f32.mrb[2].mxu0  ;;  %v731_v44 = vunpack.c.l.bf16 %v1804_v35  ;;  %v1569_v35 = vld [vmem:[%s2031_s4 + $0x8] sm:$0xff]  }
 0x132   : > { %v693_v46 = vmul.f32 0.17677669, %v688_v45  ;;  %v1448_v47 = vpop.f32.mrb[3].mxu0  ;;  %v694_v48 = vadd.f32 %v692_v43, %v1819_v42  ;;  %v835_v43 = vsel %vm554_vm0, %v823_v37, 0  ;;  %v732_v45 = vunpack.c.l.bf16 %v1806_v36 }
 0x133   : > { %v941_v36 = vsel %vm934_vm3, %v1569_v35, 0  ;;  %v1576_v35 = vld [vmem:[%s2033_s6] sm:$0xff]  }
 0x134   : > { %696 = vmax.xlane.f32.xlu0 %v694_v48  ;;  %v695_v49 = vadd.f32 %v693_v46, %v1819_v42  ;;  %1496 = vmatpush3.bf16.msra.mxu0 %v1576_v35 }
 0x135   : > { %1497 = vmatprep.subr.bf16.mxu0 %v1630_v4 }
 0x138   : > { %698 = vmax.xlane.f32.xlu0 %v695_v49 }
 0x14e   : > { %545 = vrot.lane.b32.xlu0 %v1342_v28, %s1634_s24 }
 0x1c1   : > { %v697_v53 = vpop.xlane.xlu0 %696 }
 0x1c2   : > { %v700_v54 = vsub.f32 %v694_v48, %v697_v53  ;;  %v1568_v48 = vld [vmem:[%s2031_s4] sm:$0xff]  }
 0x1c4   : > { %v702_v55 = vmul.f32 1.442695, %v700_v54  ;;  %v938_v54 = vsel %vm934_vm3, %v1568_v48, 0 }
 0x1c5   : > { %v699_v56 = vpop.xlane.xlu0 %698 }
 0x1c6   : > { %1586 = vpow2.f32 %v702_v55  ;;  %v701_v57 = vsub.f32 %v695_v49, %v699_v56  ;;  %v1570_v55 = vld [vmem:[%s2031_s4 + $0x10] sm:$0xff]  }
 0x1c7   : > { %v944_v56 = vsel %vm934_vm3, %v1570_v55, 0  ;;  %v1578_v55 = vld [vmem:[%s2033_s6 + $0x10] sm:$0xff]  }
 0x1c8   : > { %v704_v58 = vmul.f32 1.442695, %v701_v57  ;;  %v1571_v57 = vld [vmem:[%s2031_s4 + $0x18] sm:$0xff]  }
 0x1c9   : > { %v546_v8 = vpop.permute.xlu0 %545 }
 0x1ca   : > { %1588 = vpow2.f32 %v704_v58  ;;  %v947_v58 = vsel %vm934_vm3, %v1571_v57, 0  ;;  %v557_v25 = vsel %vm554_vm0, %v1341_v24, %v546_v8  ;;  %v1181_v8 = vsel %vm934_vm3, %v1584_v18, 0 }
 0x1d0   : > { %v1587_v59 = vpop.eup %1586 }
 0x1d1   : > { %706 = vadd.xlane.f32.xlu1 %v1587_v59 }
 0x1d4   : > { %v1589_v60 = vpop.eup %1588 }
 0x1d5   : > { %708 = vadd.xlane.f32.xlu1 %v1589_v60 }
 0x1e6   : > { %552 = vrot.lane.b32.xlu1 %v1343_v27, %s1633_s23  ;;  %s562_s23 = sld [smem:[#allocation2]] }
 0x25e   : > { %v707_v31 = vpop.xlane.xlu1 %706 }
 0x25f   : > { %1590 = vrcp.f32 %v707_v31 }
 0x262   : > { %v709_v32 = vpop.xlane.xlu1 %708 }
 0x263   : > { %1592 = vrcp.f32 %v709_v32 }
 0x266   : > { %v553_v29 = vpop.permute.xlu1 %552 }
 0x267   : > { %v1938_v9 = vsel %vm558_vm4, %v557_v25, %v553_v29  ;;  %v1585_v25 = vld [vmem:[%s2036_s9 + $0x8] ss:$0 sps:$4 sm:$0xff]  }
 0x268   : > { %v1184_v29 = vsel %vm934_vm3, %v1585_v25, 0 }
 0x269   : > { %v1591_v33 = vpop.eup %1590 }
 0x26a   : > { %v712_v38 = vmul.f32 %v1591_v33, %v1587_v59  ;;  %v1572_v59 = vld [vmem:[%s2031_s4 + $0x20] sm:$0xff]  }
 0x26d   : > { %v1593_v34 = vpop.eup %1592 }
 0x26e   : > { %v713_v40 = vmul.f32 %v1593_v34, %v1589_v60  ;;  %v950_v60 = vsel %vm934_vm3, %v1572_v59, 0 }
 0x270   : > { %v714_v41 = vpack.c.bf16 %v713_v40, %v712_v38 }
 0x272   : > { %1466 = vmatmul.mubr.bf16.vlgmr.msra.gmra.mrb[0].mxu1 %v714_v41 }
 0x273   : > { %1470 = vmatpush3.bf16.xpose.msra.mxu1 %v835_v43  ;;  %1471 = vmatprep.mubr.msk.bf16.mxu1 %vm1631_vm1, %v1630_v4 }
 0x274   : > { %1475 = vmatprep.subr.bf16.mxu1 %v1630_v4 }
 0x345   : > { %v815_v46 = vpop.f32.mrb[0].mxu1 }
 0x346   : > { %v1467_v47 = vpop.f32.mrb[1].mxu1  ;;  %v816_v50 = vadd.f32 %v815_v46, %v731_v44 }
 0x347   : > { %v818_v49 = vpop.f32.mrb[2].mxu1 }
 0x348   : > { %v819_v51 = vadd.f32 %v818_v49, %v732_v45  ;;  %v1468_v52 = vpop.f32.mrb[3].mxu1 }
 0x34a   : > { %v822_v53 = vpack.c.bf16 %v819_v51, %v816_v50 }
 0x34c   : > { %1472 = vmatmul.mubr.msk.bf16.vlgmr.msra.gmra.mrb[4].mxu1 %vm554_vm0, %v822_v53 }
 0x34d   : > { %1476 = vmatpush3.bf16.xpose.msra.mxu1 %v938_v54  ;;  %1491 = vmatprep.mubr.msk.bf16.mxu1 %vm1631_vm1, %v1630_v4 }
 0x34e   : > { %1477 = vmatprep.subr.bf16.mxu1 %v1630_v4 }
 0x355   : > { %1478 = vmatpush3.bf16.xpose.msra.mxu1 %v941_v36  ;;  %v1577_v36 = vld [vmem:[%s2033_s6 + $0x8] sm:$0xff]  }
 0x356   : > { %1479 = vmatprep.subr.bf16.mxu1 %v1630_v4  ;;  %1498 = vmatpush3.bf16.msra.mxu0 %v1577_v36 }
 0x357   : > { %1499 = vmatprep.subr.bf16.mxu0 %v1630_v4 }
 0x35a   : > { %1500 = vmatpush3.bf16.msra.mxu0 %v1578_v55 }
 0x35b   : > { %1501 = vmatprep.subr.bf16.mxu0 %v1630_v4 }
 0x35d   : > { %1480 = vmatpush3.bf16.xpose.msra.mxu1 %v944_v56 }
 0x35e   : > { %1481 = vmatprep.subr.bf16.mxu1 %v1630_v4 }
 0x365   : > { %1482 = vmatpush3.bf16.xpose.msra.mxu1 %v947_v58 }
 0x366   : > { %1483 = vmatprep.subr.bf16.mxu1 %v1630_v4 }
 0x36d   : > { %1484 = vmatpush3.bf16.xpose.msra.mxu1 %v950_v60 }
 0x36e   : > { %1485 = vmatprep.subr.bf16.mxu1 %v1630_v4 }
 0x375   : > { %1486 = vmatpush3.bf16.xpose.msra.mxu1 %v953_v62 }
 0x376   : > { %1487 = vmatprep.subr.bf16.mxu1 %v1630_v4 }
 0x37d   : > { %1488 = vmatpush3.bf16.xpose.msra.mxu1 %v956_v7 }
 0x37e   : > { %1489 = vmatprep.subr.bf16.mxu1 %v1630_v4 }
 0x385   : > { %1490 = vmatpush3.bf16.xpose.msra.mxu1 %v959_v3 }
 0x38c   : > { %1492 = vmatmul.mubr.msk.bf16.vlgmr.msra.gmra.mrb[8].mxu1 %vm934_vm3, %v1938_v9 }
 0x41f   : > { %v1942_v30 = vpop.f32.mrb[4].mxu1 }
 0x420   : > { %v1473_v10 = vpop.f32.mrb[5].mxu1 }
 0x421   : > { %v1944_v11 = vpop.f32.mrb[6].mxu1 }
 0x422   : > { %v1474_v12 = vpop.f32.mrb[7].mxu1 }
 0x423   : > { %v1067_v12 = vunpack.c.l.bf16 %v1938_v9 }
 0x45f   : > { %v995_v14 = vpop.f32.mrb[8].mxu1 }
 0x460   : > { %v1493_v15 = vpop.f32.mrb[9].mxu1  ;;  %v1002_v16 = vmul.f32 %v1334_v13, %v995_v14 }
 0x461   : > { %v998_v21 = vpop.f32.mrb[10].mxu1 }
 0x462   : > { %1004 = vadd.xlane.f32.xlu1 %v1002_v16  ;;  %v1494_v22 = vpop.f32.mrb[11].mxu1  ;;  %v1003_v23 = vmul.f32 %v1334_v13, %v998_v21 }
 0x464   : > { %1006 = vadd.xlane.f32.xlu0 %v1003_v23 }
 0x4ef   : > { %v1005_v26 = vpop.xlane.xlu1 %1004 }
 0x4f0   : > { %v1008_v27 = vmul.f32 0.125, %v1005_v26 }
 0x4f1   : > { %v1007_v28 = vpop.xlane.xlu0 %1006 }
 0x4f2   : > { %v1010_v31 = vsub.f32 %v995_v14, %v1008_v27  ;;  %v1009_v32 = vmul.f32 0.125, %v1007_v28  ;;  %v1068_v14 = vunpack.c.h.bf16 %v1938_v9 }
 0x4f4   : > { %v1011_v33 = vsub.f32 %v998_v21, %v1009_v32  ;;  %v1012_v34 = vmul.f32 %v1334_v13, %v1010_v31 }
 0x4f6   : > { %v1014_v37 = vmul.f32 %v1012_v34, %v1012_v34  ;;  %v1013_v38 = vmul.f32 %v1334_v13, %v1011_v33 }
 0x4f8   : > { %1016 = vadd.xlane.f32.xlu0 %v1014_v37  ;;  %v1015_v39 = vmul.f32 %v1013_v38, %v1013_v38  ;;  %v1239_v37 = vstv %s562_s23 }
 0x4fa   : > { %1018 = vadd.xlane.f32.xlu1 %v1015_v39 }
 0x585   : > { %v1017_v40 = vpop.xlane.xlu0 %1016 }
 0x586   : > { %v1020_v41 = vmul.f32 0.125, %v1017_v40  ;;  %v1227_v40 = vld [vmem:[%s473_s12] sm:$0xff] }
 0x587   : > { %v1019_v43 = vpop.xlane.xlu1 %1018 }
 0x588   : > { %v1022_v44 = vadd.f32 1e-05, %v1020_v41  ;;  %v1021_v45 = vmul.f32 0.125, %v1019_v43 }
 0x58a   : > { %1594 = vrsqrt.f32 %v1022_v44  ;;  %v1023_v46 = vadd.f32 1e-05, %v1021_v45  ;;  %v1228_v45 = vld [vmem:[%s473_s12 + $0x8] sm:$0xff] }
 0x58c   : > { %1596 = vrsqrt.f32 %v1023_v46 }
 0x594   : > { %v1595_v47 = vpop.eup %1594 }
 0x595   : > { %v1026_v48 = vmul.f32 %v1595_v47, %v1010_v31 }
 0x596   : > { %v1597_v49 = vpop.eup %1596 }
 0x597   : > { %v1028_v50 = vmul.f32 0.17677669, %v1026_v48  ;;  %v1027_v51 = vmul.f32 %v1597_v49, %v1011_v33  ;;  %v1362_v33 = vld [vmem:[%s2035_s8] ss:$0 sm:$0xff] }
 0x598   : > { %v872_v34 = vadd.f32 %v1362_v33, %v1942_v30  ;;  %v875_v39 = vadd.f32 %v1362_v33, %v1944_v11 }
 0x599   : > { %v1030_v52 = vadd.f32 %v1028_v50, %v1819_v42  ;;  %v1029_v53 = vmul.f32 0.17677669, %v1027_v51 }
 0x59b   : > { %1032 = vmax.xlane.f32.xlu0 %v1030_v52  ;;  %v1031_v54 = vadd.f32 %v1029_v53, %v1819_v42  ;;  %v1579_v42 = vld [vmem:[%s2033_s6 + $0x18] sm:$0xff]  }
 0x59c   : > { %1502 = vmatpush3.bf16.msra.mxu0 %v1579_v42 }
 0x59d   : > { %1034 = vmax.xlane.f32.xlu1 %v1031_v54  ;;  %1503 = vmatprep.subr.bf16.mxu0 %v1630_v4 }
 0x5a0   : > { %1504 = vmatpush3.bf16.msra.mxu0 %v1580_v0 }
 0x5a1   : > { %1505 = vmatprep.subr.bf16.mxu0 %v1630_v4 }
 0x5a4   : > { %1506 = vmatpush3.bf16.msra.mxu0 %v1581_v1 }
 0x5a5   : > { %1507 = vmatprep.subr.bf16.mxu0 %v1630_v4 }
 0x5a8   : > { %1508 = vmatpush3.bf16.msra.mxu0 %v1582_v5 }
 0x5a9   : > { %1509 = vmatprep.subr.bf16.mxu0 %v1630_v4 }
 0x5ac   : > { %1510 = vmatpush3.bf16.msra.mxu0 %v1583_v6 }
 0x5ad   : > { %1515 = vmatprep.subr.bf16.mxu0 %v1630_v4 }
 0x628   : > { %v1033_v56 = vpop.xlane.xlu0 %1032 }
 0x629   : > { %v1036_v57 = vsub.f32 %v1030_v52, %v1033_v56 }
 0x62a   : > { %v1035_v58 = vpop.xlane.xlu1 %1034 }
 0x62b   : > { %v1038_v59 = vmul.f32 1.442695, %v1036_v57  ;;  %v1037_v60 = vsub.f32 %v1031_v54, %v1035_v58 }
 0x62d   : > { %1598 = vpow2.f32 %v1038_v59  ;;  %v1040_v61 = vmul.f32 1.442695, %v1037_v60 }
 0x62f   : > { %1600 = vpow2.f32 %v1040_v61 }
 0x637   : > { %v1599_v62 = vpop.eup %1598 }
 0x638   : > { %1042 = vadd.xlane.f32.xlu0 %v1599_v62 }
 0x639   : > { %v1601_v63 = vpop.eup %1600 }
 0x63a   : > { %1044 = vadd.xlane.f32.xlu1 %v1601_v63 }
 0x6c5   : > { %v1043_v7 = vpop.xlane.xlu0 %1042 }
 0x6c6   : > { %1602 = vrcp.f32 %v1043_v7 }
 0x6c7   : > { %v1045_v17 = vpop.xlane.xlu1 %1044 }
 0x6c8   : > { %1604 = vrcp.f32 %v1045_v17 }
 0x6d0   : > { %v1603_v19 = vpop.eup %1602 }
 0x6d1   : > { %v1048_v2 = vmul.f32 %v1603_v19, %v1599_v62 }
 0x6d2   : > { %v1605_v20 = vpop.eup %1604 }
 0x6d3   : > { %v1049_v3 = vmul.f32 %v1605_v20, %v1601_v63 }
 0x6d5   : > { %v1050_v24 = vpack.c.bf16 %v1049_v3, %v1048_v2 }
 0x6d7   : > { %1512 = vmatmul.mubr.bf16.vlgmr.msra.gmra.mrb[4].mxu0 %v1050_v24 }
 0x6d8   : > { %1516 = vmatpush3.bf16.xpose.msra.mxu0 %v1181_v8  ;;  %1519 = vmatprep.mubr.msk.bf16.mxu0 %vm1631_vm1, %v1630_v4 }
 0x6d9   : > { %1517 = vmatprep.subr.bf16.mxu0 %v1630_v4  ;;  %v1381_v4 = vld [vmem:[%s2037_s10] ss:$0 sm:$0xff] }
 0x6e0   : > { %1518 = vmatpush3.bf16.xpose.msra.mxu0 %v1184_v29 }
 0x7aa   : > { %v1151_v10 = vpop.f32.mrb[4].mxu0 }
 0x7ab   : > { %v1513_v13 = vpop.f32.mrb[5].mxu0  ;;  %v1152_v16 = vadd.f32 %v1151_v10, %v1067_v12 }
 0x7ac   : > { %v1154_v15 = vpop.f32.mrb[6].mxu0 }
 0x7ad   : > { %v1155_v21 = vadd.f32 %v1154_v15, %v1068_v14  ;;  %v1514_v22 = vpop.f32.mrb[7].mxu0 }
 0x7af   : > { %v1158_v23 = vpack.c.bf16 %v1155_v21, %v1152_v16 }
 0x7b1   : > { %1520 = vmatmul.mubr.msk.bf16.vlgmr.msra.gmra.mrb[8].mxu0 %vm934_vm3, %v1158_v23 }
 0x884   : > { %v1220_v26 = vpop.f32.mrb[8].mxu0 }
 0x885   : > { %v1221_v27 = vadd.f32 %v1381_v4, %v1220_v26  ;;  %v1521_v28 = vpop.f32.mrb[9].mxu0 }
 0x886   : > { %v1223_v31 = vpop.f32.mrb[10].mxu0 }
 0x887   : > { %v1224_v32 = vadd.f32 %v1381_v4, %v1223_v31  ;;  %1231 = vrot.lane.b32.xlu0 %v1221_v27, %s1634_s24  ;;  %v1522_v9 = vpop.f32.mrb[11].mxu0 }
 0x889   : > { %1233 = vrot.lane.b32.xlu1 %v1224_v32, %s1634_s24  ;;  %s480_s24 = scalar_lea.vmem %s2038_s11, %s1331_s26 }
 0x8f9   : > { %v1232_v38 = vpop.permute.xlu0 %1231 }
 0x8fa   : > { %v1237_v41 = vsel %vm554_vm0, %v872_v34, %v1232_v38 }
 0x8fb   : > { %v1240_v43 = vmul.f32 %v1239_v37, %v1237_v41  ;;  %v1234_v44 = vpop.permute.xlu1 %1233 }
 0x8fc   : > { %v1238_v46 = vsel %vm554_vm0, %v875_v39, %v1234_v44 }
 0x8fd   : > { %v1242_v47 = vadd.f32 %v1240_v43, %v1227_v40  ;;  %v1241_v48 = vmul.f32 %v1239_v37, %v1238_v46 }
 0x8ff   : > { %1245 = vst.msk [vmem:[%s480_s24] sm:$0xff] %vm1244_vm5, %v1242_v47  ;;  %v1243_v30 = vadd.f32 %v1241_v48, %v1228_v45 }
 0x901   : > { %1246 = vst.msk [vmem:[%s480_s24 + $0x8] sm:$0xff] %vm1244_vm5, %v1243_v30 }
 0x902 PF: > { %p19_p9 = scmp.ge.s32.totalorder %s1715_s22, 4   ;;  %s2039_s19 = smov %s1624_s20 }
 0x903   : > { %s2040_s20 = smov %s1724_s25  ;;  %s2041_s21 = smov %s1715_s22 }
 0x904   :  { %21 = sbr.rel (!%p19_p9) target bundleno = 4 (0x4), region = 146 }

</bundles_post_ra>
